<compile_context>
chip_gen: v7x
topology: tpu7x:2x2x1
jax: 0.10.0
libtpu: 0.0.40
codegen_flags: <defaults>
</compile_context>

<pallas_src>
import math
import functools

import jax
import jax.numpy as jnp
from jax.experimental import pallas as pl
from jax.experimental.pallas import tpu as pltpu


_FEATURE_SIZES = {"month": 13, "day": 32, "weekday": 7, "hour": 24, "minute": 4}


def _round_up(a, m):
    return ((a + m - 1) // m) * m


def _cdiv(a, b):
    return -(-a // b)


def fixed_embedding_table(c_in, d_model):
    """Sinusoidal table identical to FixedEmbedding's weight (c_in, d_model)."""
    assert d_model % 2 == 0, "FixedEmbedding (like the PyTorch original) requires even d_model"
    position = jnp.arange(c_in, dtype=jnp.float32)[:, None]                  # (c_in, 1)
    div_term = jnp.exp(
        jnp.arange(0, d_model, 2, dtype=jnp.float32) * -(math.log(10000.0) / d_model)
    )                                                                        # (d_model/2,)
    args = position * div_term                                               # (c_in, d/2)
    w = jnp.zeros((c_in, d_model), dtype=jnp.float32)
    w = w.at[:, 0::2].set(jnp.sin(args))
    w = w.at[:, 1::2].set(jnp.cos(args))
    return w


def _feature_layout(freq):
    names = ["month", "day", "weekday", "hour"] + (["minute"] if freq == "t" else [])
    sizes = [_FEATURE_SIZES[n] for n in names]
    offsets, acc = [], 0
    for s in sizes:
        offsets.append(acc)
        acc += s
    return names, sizes, offsets, acc


def build_combined_table(d_model, freq="h", v_pad=128, dtype=jnp.bfloat16):
    """Concatenate per-feature fixed tables; returns (table[v_pad, d_model], offsets)."""
    _, sizes, offsets, total = _feature_layout(freq)
    assert total <= v_pad
    combined = jnp.concatenate(
        [fixed_embedding_table(s, d_model) for s in sizes], axis=0
    )                                                                        # (total, d_model)
    combined = jnp.pad(combined, ((0, v_pad - total), (0, 0)))               # (v_pad, d_model)
    return combined.astype(dtype), offsets


# ----------------------------------------------------------------------------
# Pallas kernel: multi-hot gather-sum via one MXU matmul per tile
# ----------------------------------------------------------------------------
def _temporal_embed_kernel(idx_ref, table_ref, out_ref, *, offsets):
    # idx_ref:   (TILE, F) int32 raw feature indices
    # table_ref: (V_PAD, D) combined embedding table (bf16 or f32)
    # out_ref:   (TILE, D) float32
    idx = idx_ref[...]
    tbl = table_ref[...]
    tile = idx.shape[0]
    vpad = tbl.shape[0]

    row_ids = jax.lax.broadcasted_iota(jnp.int32, (tile, vpad), 1)
    # Per-feature row ranges are disjoint -> OR-accumulate boolean masks,
    # single cast to the matmul input dtype at the end.  Offsets are static
    # Python ints (unrolled loop, no extra pass over the index tensor).
    hit = None
    for k, off in enumerate(offsets):
        m = row_ids == (idx[:, k : k + 1] + off)
        hit = m if hit is None else (hit | m)
    multi_hot = hit.astype(tbl.dtype)                                        # 0/1, exact in bf16

    out_ref[...] = jnp.dot(
        multi_hot, tbl, preferred_element_type=jnp.float32
    ).astype(out_ref.dtype)


def temporal_embedding(x, d_model, freq="h", *, tile=2048, v_pad=128,
                       table_dtype=jnp.bfloat16, vmem_budget_bytes=24 * 2**20):
    """x: int array [B, L, >= num_features] with (month, day, weekday, hour[, minute]).

    Returns float32 [B, L, d_model] equal to the sum of the fixed embeddings.
    """
    names, _, _, _ = _feature_layout(freq)
    nfeat = len(names)
    table, offsets = build_combined_table(d_model, freq, v_pad, table_dtype)
    tbl_bytes = jnp.dtype(table_dtype).itemsize

    x = x.astype(jnp.int32)
    b, l = x.shape[0], x.shape[1]
    n = b * l
    idx = x[:, :, :nfeat].reshape(n, nfeat)                                  # raw indices

    # ---- tile selection: large row tiles, VMEM-budgeted (incl. intermediates),
    #      ragged last block (no row padding), even step count when large.
    def _vmem_est(t):
        out_b = t * d_model * 4 * 2                      # output double buffer (f32)
        idx_b = t * 128 * 4 * 2                          # idx lane-padded to 128, double buffer
        tbl_b = v_pad * d_model * tbl_bytes * 2          # grid-invariant table (double buffer worst case)
        tmp_b = 3 * t * 128 * 4                          # row_ids / mask / multi_hot intermediates
        return out_b + idx_b + tbl_b + tmp_b

    tile_eff = max(8, min(int(tile), _round_up(n, 8)))
    tile_eff = _round_up(tile_eff, 8)
    while tile_eff > 8 and _vmem_est(tile_eff) > vmem_budget_bytes:
        tile_eff = max(8, _round_up(tile_eff // 2, 8))

    steps = _cdiv(n, tile_eff)
    if n > 512:
        if steps < 2:                                    # keep both v7x TCs busy
            tile_eff = max(8, _round_up(_cdiv(n, 2), 8))
        elif steps % 2 == 1:                             # prefer an even step count
            tile_eff = max(8, _round_up(_cdiv(n, steps + 1), 8))
    steps = _cdiv(n, tile_eff)
    grid = (steps,)

    cost = pl.CostEstimate(
        flops=2 * n * v_pad * d_model,
        transcendentals=0,
        bytes_accessed=4 * n * d_model + 4 * n * nfeat + tbl_bytes * v_pad * d_model,
    )
    kernel = functools.partial(
        _temporal_embed_kernel, offsets=tuple(int(o) for o in offsets)
    )

    out = pl.pallas_call(
        kernel,
        out_shape=jax.ShapeDtypeStruct((n, d_model), jnp.float32),
        grid_spec=pltpu.PrefetchScalarGridSpec(
            num_scalar_prefetch=0,
            grid=grid,
            in_specs=[
                pl.BlockSpec((tile_eff, nfeat), lambda i: (i, 0)),
                pl.BlockSpec((v_pad, d_model), lambda i: (0, 0)),   # grid-invariant, no re-DMA
            ],
            out_specs=pl.BlockSpec((tile_eff, d_model), lambda i: (i, 0)),
        ),
        compiler_params=pltpu.CompilerParams(
            dimension_semantics=("parallel",),
            vmem_limit_bytes=48 * 2**20,                 # under v7x's 64 MiB physical VMEM
        ),
        cost_estimate=cost,
    )(idx, table)

    return out.reshape(b, l, d_model)


# ----------------------------------------------------------------------------
# Reference (pure JAX, f32) for verification
# ----------------------------------------------------------------------------
def temporal_embedding_ref(x, d_model, freq="h"):
    x = x.astype(jnp.int32)
    _, sizes, _, _ = _feature_layout(freq)
    out = jnp.zeros((x.shape[0], x.shape[1], d_model), dtype=jnp.float32)
    for k, s in enumerate(sizes):
        out = out + jnp.take(fixed_embedding_table(s, d_model), x[:, :, k], axis=0)
    return out


if __name__ == "__main__":
    key = jax.random.PRNGKey(0)

    # Case 1: tiny, freq='t' (all 5 embeddings), d_model=32 (< 128) exercises
    # masked in-kernel stores (no column padding / post-slice).
    B, L, d_model = 2, 8, 32
    k0, k1, k2, k3, k4, k5 = jax.random.split(key, 6)
    month = jax.random.randint(k0, (B, L), 0, 13)
    day = jax.random.randint(k1, (B, L), 0, 32)
    weekday = jax.random.randint(k2, (B, L), 0, 7)
    hour = jax.random.randint(k3, (B, L), 0, 24)
    minute = jax.random.randint(k4, (B, L), 0, 4)
    x = jnp.stack([month, day, weekday, hour, minute], axis=-1)              # (B, L, 5)

    out = jax.block_until_ready(temporal_embedding(x, d_model, freq="t"))
    ref = temporal_embedding_ref(x, d_model, freq="t")
    assert out.shape == (B, L, d_model)
    # bf16 table: each of the 5 summed sin/cos entries carries <= ~4e-3 abs error.
    assert jnp.allclose(out, ref, atol=5e-2, rtol=0), "mismatch vs reference (case 1, bf16 table)"

    # Case 2: freq='h' (4 embeddings), n=600 not divisible by the tile ->
    # ragged last block (masked edge writes), d_model=128 -> lane-dense stores.
    B2, L2, d2 = 2, 300, 128
    ka, kb, kc, kd = jax.random.split(k5, 4)
    x2 = jnp.stack(
        [
            jax.random.randint(ka, (B2, L2), 0, 13),
            jax.random.randint(kb, (B2, L2), 0, 32),
            jax.random.randint(kc, (B2, L2), 0, 7),
            jax.random.randint(kd, (B2, L2), 0, 24),
        ],
        axis=-1,
    )                                                                        # (B2, L2, 4)
    out2 = jax.block_until_ready(temporal_embedding(x2, d2, freq="h"))
    ref2 = temporal_embedding_ref(x2, d2, freq="h")
    assert out2.shape == (B2, L2, d2)
    assert jnp.allclose(out2, ref2, atol=5e-2, rtol=0), "mismatch vs reference (case 2, bf16 table)"

    # Case 3: f32 table path (for users needing tighter numerics).
    out3 = jax.block_until_ready(temporal_embedding(x, d_model, freq="t", table_dtype=jnp.float32))
    assert jnp.allclose(out3, ref, atol=1e-3, rtol=0), "mismatch vs reference (case 3, f32 table)"

    print("KERNEL_OK")
</pallas_src>

<mosaic_0001>
module attributes {stable_mosaic.version = 11 : i64} {
  func.func @_temporal_embed_kernel(%arg0: i32, %arg1: memref<16x5xi32, #tpu.memory_space<vmem>>, %arg2: memref<128x32xbf16, #tpu.memory_space<vmem>>, %arg3: memref<16x32xf32, #tpu.memory_space<vmem>>) attributes {dimension_semantics = [#tpu.dimension_semantics<parallel>], iteration_bounds = array<i64: 1>, scalar_prefetch = 0 : i64, scratch_operands = 0 : i64, tpu.core_type = #tpu.core_type<tc>, window_params = [{transform_indices = @transform_0, window_bounds = array<i64: 16, 5>}, {pipeline_mode = #tpu.pipeline_mode<synchronous>, transform_indices = @transform_1, window_bounds = array<i64: 128, 32>}, {transform_indices = @transform_2, window_bounds = array<i64: 16, 32>}]} {
    %c0 = arith.constant 0 : index
    %c0_0 = arith.constant 0 : index
    %0 = vector.load %arg1[%c0, %c0_0] : memref<16x5xi32, #tpu.memory_space<vmem>>, vector<16x5xi32>
    %c0_1 = arith.constant 0 : index
    %c0_2 = arith.constant 0 : index
    %1 = vector.load %arg2[%c0_1, %c0_2] : memref<128x32xbf16, #tpu.memory_space<vmem>>, vector<128x32xbf16>
    %2 = tpu.iota {dimensions = array<i32: 1>} : vector<16x128xi32>
    %3 = vector.extract_strided_slice %0 {offsets = [0, 0], sizes = [16, 1], strides = [1, 1]} : vector<16x5xi32> to vector<16x1xi32>
    %c0_i32 = arith.constant 0 : i32
    %4 = vector.broadcast %c0_i32 : i32 to vector<16x1xi32>
    %5 = arith.addi %3, %4 : vector<16x1xi32>
    %6 = vector.broadcast %5 : vector<16x1xi32> to vector<16x128xi32>
    %7 = arith.cmpi eq, %2, %6 : vector<16x128xi32>
    %8 = vector.extract_strided_slice %0 {offsets = [0, 1], sizes = [16, 1], strides = [1, 1]} : vector<16x5xi32> to vector<16x1xi32>
    %c13_i32 = arith.constant 13 : i32
    %9 = vector.broadcast %c13_i32 : i32 to vector<16x1xi32>
    %10 = arith.addi %8, %9 : vector<16x1xi32>
    %11 = vector.broadcast %10 : vector<16x1xi32> to vector<16x128xi32>
    %12 = arith.cmpi eq, %2, %11 : vector<16x128xi32>
    %13 = arith.ori %7, %12 : vector<16x128xi1>
    %14 = vector.extract_strided_slice %0 {offsets = [0, 2], sizes = [16, 1], strides = [1, 1]} : vector<16x5xi32> to vector<16x1xi32>
    %c45_i32 = arith.constant 45 : i32
    %15 = vector.broadcast %c45_i32 : i32 to vector<16x1xi32>
    %16 = arith.addi %14, %15 : vector<16x1xi32>
    %17 = vector.broadcast %16 : vector<16x1xi32> to vector<16x128xi32>
    %18 = arith.cmpi eq, %2, %17 : vector<16x128xi32>
    %19 = arith.ori %13, %18 : vector<16x128xi1>
    %20 = vector.extract_strided_slice %0 {offsets = [0, 3], sizes = [16, 1], strides = [1, 1]} : vector<16x5xi32> to vector<16x1xi32>
    %c52_i32 = arith.constant 52 : i32
    %21 = vector.broadcast %c52_i32 : i32 to vector<16x1xi32>
    %22 = arith.addi %20, %21 : vector<16x1xi32>
    %23 = vector.broadcast %22 : vector<16x1xi32> to vector<16x128xi32>
    %24 = arith.cmpi eq, %2, %23 : vector<16x128xi32>
    %25 = arith.ori %19, %24 : vector<16x128xi1>
    %26 = vector.extract_strided_slice %0 {offsets = [0, 4], sizes = [16, 1], strides = [1, 1]} : vector<16x5xi32> to vector<16x1xi32>
    %c76_i32 = arith.constant 76 : i32
    %27 = vector.broadcast %c76_i32 : i32 to vector<16x1xi32>
    %28 = arith.addi %26, %27 : vector<16x1xi32>
    %29 = vector.broadcast %28 : vector<16x1xi32> to vector<16x128xi32>
    %30 = arith.cmpi eq, %2, %29 : vector<16x128xi32>
    %31 = arith.ori %25, %30 : vector<16x128xi1>
    %32 = arith.extui %31 : vector<16x128xi1> to vector<16x128xi32>
    %33 = arith.sitofp %32 : vector<16x128xi32> to vector<16x128xf32>
    %34 = arith.truncf %33 : vector<16x128xf32> to vector<16x128xbf16>
    %cst = arith.constant dense<0.000000e+00> : vector<16x32xf32>
    %35 = tpu.matmul %34, %1, %cst {dimension_numbers = #tpu.dot_dimension_numbers<[1], [0], [0], [1], [0, 0, 1, 1], [], []>} : vector<16x128xbf16>, vector<128x32xbf16>, vector<16x32xf32> -> vector<16x32xf32>
    %c0_3 = arith.constant 0 : index
    %c0_4 = arith.constant 0 : index
    %36 = vector.load %arg3[%c0_3, %c0_4] : memref<16x32xf32, #tpu.memory_space<vmem>>, vector<16x32xf32>
    tpu.vector_store %arg3[%c0_3, %c0_4], %35 {strides = array<i32>} : memref<16x32xf32, #tpu.memory_space<vmem>>, vector<16x32xf32>,
    return
  }
  func.func @transform_0(%arg0: i32) -> (i32, i32) {
    %c0_i32 = arith.constant 0 : i32
    %c0_i32_0 = arith.constant 0 : i32
    return %arg0, %c0_i32 : i32, i32
  }
  func.func @transform_1(%arg0: i32) -> (i32, i32) {
    %c0_i32 = arith.constant 0 : i32
    %c0_i32_0 = arith.constant 0 : i32
    %c0_i32_1 = arith.constant 0 : i32
    return %c0_i32, %c0_i32_0 : i32, i32
  }
  func.func @transform_2(%arg0: i32) -> (i32, i32) {
    %c0_i32 = arith.constant 0 : i32
    %c0_i32_0 = arith.constant 0 : i32
    return %arg0, %c0_i32 : i32, i32
  }
}

</mosaic_0001>

<bundles_post_ra>
// kernel: tpu_custom_call.1
= control target key start
LH: loop header
LB: loop body
LE: loop exit
PB: predicated region body
PF: predicated region fallthrough
CT: control target
= control target key end

     0   :  { %v291_v2 = vmov 0   ;;  %v292_v3 = vmov 1   ;;  %v293_v7 = vmov 0.0   ;;  %s369_s0 = inlined_call_operand.vmem [shape: s32[16,5], index: 0, kind: input, shape index: {}]   ;;  %s370_s1 = inlined_call_operand.vmem [shape: bf16[128,32], index: 1, kind: input, shape index: {}]   ;;  %s371_s2 = inlined_call_operand.hbm [shape: f32[16,32], index: 2, kind: output, shape index: {}]  }
   0x1   :  { %v13_v0 = vld [vmem:[%s369_s0] sm:$0xff]  ;;  %v14_v1 = vld [vmem:[%s369_s0 + $0x8] sm:$0xff]  ;;  %251 = vset.pattern.permute.xlu0 %v291_v2  ;;  %252 = vset.pattern.permute.xlu1 %v292_v3  ;;  %v261_v11 = vld [vmem:[%s370_s1 + $0x10] sm:$0xff]  }
   0x2   :  { %v41_v4 = vadd.s32 13, %v13_v0  ;;  %34 = vperm.xlu0 %251, %v13_v0   ;;  %v42_v5 = vadd.s32 13, %v14_v1  ;;  %v259_v6 = vld [vmem:[%s370_s1] sm:$0xff]   ;;  %221 = vmatprep.subr.bf16.mxu0 %v293_v7  ;;  %v260_v8 = vld [vmem:[%s370_s1 + $0x8] sm:$0xff]   ;;  %v53_v9 = vadd.s32 45, %v13_v0  ;;  %v54_v10 = vadd.s32 45, %v14_v1 }
   0x3   :  { %222 = vmatpush3.bf16.msra.mxu0 %v259_v6 }
   0x4   :  { %44 = vperm.xlu1 %252, %v41_v4   ;;  %223 = vmatprep.subr.bf16.mxu0 %v293_v7 }
   0x6   :  { %37 = vperm.xlu0 %251, %v14_v1  }
   0x7   :  { %224 = vmatpush3.bf16.msra.mxu0 %v260_v8 }
   0x8   :  { %47 = vperm.xlu1 %252, %v42_v5  }
   0x9   :  { %7 = vsyncpa [#allocation3], 0  ;;  %v294_v12 = vmov 2   ;;  %225 = vmatprep.subr.bf16.mxu0 %v293_v7  ;;  %v66_v13 = vadd.s32 52, %v14_v1  ;;  %v65_v14 = vadd.s32 52, %v13_v0  ;;  %v262_v15 = vld [vmem:[%s370_s1 + $0x18] sm:$0xff]   ;;  %v31_v28 = vlaneseq }
   0xa   :  { %253 = vset.pattern.permute.xlu0 %v294_v12  ;;  %v295_v16 = vmov 3   ;;  %v263_v17 = vld [vmem:[%s370_s1 + $0x20] sm:$0xff]   ;;  %v77_v18 = vadd.s32 76, %v13_v0  ;;  %v296_v19 = vmov 4   ;;  %v264_v20 = vld [vmem:[%s370_s1 + $0x28] sm:$0xff]   ;;  %v78_v21 = vadd.s32 76, %v14_v1 }
   0xb   :  { %56 = vperm.xlu0 %253, %v53_v9   ;;  %226 = vmatpush3.bf16.msra.mxu0 %v261_v11  ;;  %v265_v22 = vld [vmem:[%s370_s1 + $0x30] sm:$0xff]   ;;  %v266_v23 = vld [vmem:[%s370_s1 + $0x38] sm:$0xff]   ;;  %vm297_vm0 = vmmov 0   ;;  %v32_v30 = vand.u32 127, %v31_v28  ;;  %s298_s1 = smov [#allocation2]  }
   0xc   :  { %254 = vset.pattern.permute.xlu1 %v294_v12  ;;  %227 = vmatprep.subr.bf16.mxu0 %v293_v7  ;;  %s191_s28 = sshll.u32 %s298_s1, 4  ;;  %s192_s28 = int_to_ptr.vmem [resolvable:$true] %s191_s28 }
   0xd   :  { %59 = vperm.xlu1 %254, %v54_v10   ;;  %237 = vmatprep.mubr.msk.bf16.mxu0 %vm297_vm0, %v293_v7  ;;  %s267_s29 = scalar_lea.vmem %s192_s28, 256  ;;  %p272_p1 = scmp.lt.s32.totalorder %s192_s28, %s192_s28 }
   0xe   :  { %p268_p0 = scmp.ne.s32.totalorder %s192_s28, %s267_s29  ;;  %p273_p2 = scmp.lt.s32.totalorder %s267_s29, %s267_s29 }
   0xf   :  { %256 = vset.pattern.permute.xlu0 %v295_v16  ;;  %228 = vmatpush3.bf16.msra.mxu0 %v262_v15 }
  0x10   :  { %71 = vperm.xlu0 %256, %v66_v13   ;;  %229 = vmatprep.subr.bf16.mxu0 %v293_v7  ;;  %p274_p3 = por %p273_p2, %p272_p1 }
  0x11   :  { %255 = vset.pattern.permute.xlu1 %v295_v16 }
  0x12   :  { %68 = vperm.xlu1 %255, %v65_v14   ;;  %p275_p4 = pnand %p274_p3, %p268_p0 }
  0x13   :  { %230 = vmatpush3.bf16.msra.mxu0 %v263_v17 }
  0x14   :  { %258 = vset.pattern.permute.xlu0 %v296_v19  ;;  %231 = vmatprep.subr.bf16.mxu0 %v293_v7 }
  0x16   :  { %257 = vset.pattern.permute.xlu1 %v296_v19 }
  0x17   :  { %80 = vperm.xlu1 %257, %v77_v18   ;;  %232 = vmatpush3.bf16.msra.mxu0 %v264_v20 }
  0x18   :  { %233 = vmatprep.subr.bf16.mxu0 %v293_v7 }
  0x1b   :  { %83 = vperm.xlu1 %257, %v78_v21   ;;  %234 = vmatpush3.bf16.msra.mxu0 %v265_v22 }
  0x1c   :  { %235 = vmatprep.subr.bf16.mxu0 %v293_v7 }
  0x1f   :  { %236 = vmatpush3.bf16.msra.mxu0 %v266_v23 }
  0x81   :  { %v35_v24 = vpop.permute.xlu0 %34 }
  0x82   :  { %vm39_vm1 = vcmp.eq.s32.totalorder %v32_v30, %v35_v24 }
  0x83   :  { %v45_v25 = vpop.permute.xlu1 %44 }
  0x84   :  { %vm49_vm2 = vcmp.eq.s32.totalorder %v32_v30, %v45_v25 }
  0x85   :  { %v38_v27 = vpop.permute.xlu0 %37  ;;  %vm51_vm6 = vmor %vm39_vm1, %vm49_vm2 }
  0x86   :  { %vm40_vm3 = vcmp.eq.s32.totalorder %v32_v30, %v38_v27 }
  0x87   :  { %v48_v26 = vpop.permute.xlu1 %47 }
  0x88   :  { %vm50_vm4 = vcmp.eq.s32.totalorder %v32_v30, %v48_v26 }
  0x89   :  { %vm52_vm8 = vmor %vm40_vm3, %vm50_vm4  ;;  %vm183_vm3 = vcmask 261120  }
  0x8a   :  { %v57_v31 = vpop.permute.xlu0 %56 }
  0x8b   :  { %vm61_vm5 = vcmp.eq.s32.totalorder %v32_v30, %v57_v31 }
  0x8c   :  { %v60_v29 = vpop.permute.xlu1 %59  ;;  %vm63_vm10 = vmor %vm51_vm6, %vm61_vm5 }
  0x8d   :  { %vm62_vm7 = vcmp.eq.s32.totalorder %v32_v30, %v60_v29 }
  0x8e   :  { %vm64_vm12 = vmor %vm52_vm8, %vm62_vm7 }
  0x8f   :  { %v72_v33 = vpop.permute.xlu0 %71 }
  0x90   :  { %vm74_vm13 = vcmp.eq.s32.totalorder %v32_v30, %v72_v33 }
  0x91   :  { %v69_v32 = vpop.permute.xlu1 %68  ;;  %vm76_vm0 = vmor %vm64_vm12, %vm74_vm13 }
  0x92   :  { %vm73_vm9 = vcmp.eq.s32.totalorder %v32_v30, %v69_v32 }
  0x93   :  { %vm75_vm14 = vmor %vm63_vm10, %vm73_vm9 }
  0x96   :  { %v81_v34 = vpop.permute.xlu1 %80 }
  0x97   :  { %vm85_vm11 = vcmp.eq.s32.totalorder %v32_v30, %v81_v34 }
  0x98   :  { %vm87_vm15 = vmor %vm75_vm14, %vm85_vm11 }
  0x99   :  { %v202_v36 = vsel %vm87_vm15, 1.0, %v293_v7 }
  0x9a   :  { %v84_v35 = vpop.permute.xlu1 %83 }
  0x9b   :  { %vm86_vm1 = vcmp.eq.s32.totalorder %v32_v30, %v84_v35 }
  0x9c   :  { %vm88_vm2 = vmor %vm76_vm0, %vm86_vm1 }
  0x9d   :  { %v203_v37 = vsel %vm88_vm2, 1.0, %v293_v7 }
  0x9e   :  { %v93_v38 = vpack.c.bf16 %v203_v37, %v202_v36 }
  0xa0   :  { %238 = vmatmul.mubr.bf16.vlgmr.msra.gmra.mrb[0].mxu0 %v93_v38 }
 0x173   :  { %v176_v39 = vpop.f32.mrb[0].mxu0 }
 0x174   :  { %184 = vst.msk [vmem:[#allocation2] sm:$0xff] %vm183_vm3, %v176_v39  ;;  %v239_v40 = vpop.f32.mrb[1].mxu0 }
 0x175   :  { %v179_v41 = vpop.f32.mrb[2].mxu0 }
 0x176   :  { %185 = vst.msk [vmem:[#allocation2 + $0x8] sm:$0xff] %vm183_vm3, %v179_v41  ;;  %v240_v42 = vpop.f32.mrb[3].mxu0 }
 0x177   :  { %278 = shalt.err (!%p275_p4)
}
 0x178   :  { %s279_s4 = scalar_lea.hbm %s371_s2, 256 }
 0x179   :  { %p280_p5 = scmp.ne.s32.totalorder %s371_s2, %s279_s4  ;;  %p283_p6 = scmp.lt.u32.totalorder %s279_s4, %s371_s2 }
 0x17b   :  { %p285_p7 = pnand %p283_p6, %p280_p5 }
 0x17d   :  { %288 = shalt.err (!%p285_p7)
}
 0x17e   :  { %s299_s9 = smov 128   ;;  %s300_s10 = smov 8  }
 0x17f   :  { %197 = dma.vmem_to_hbm [thread:$0]  %s192_s28, 256, %s371_s2, [#allocation3], %s299_s9, %s299_s9, %s300_s10  }
 0x180   :  { %289 = dma.done.wait [#allocation3], 256  }
 0x181   :  { %290 = vsyncadd [#allocation3], 4294967040 }
 0x182   :  { %201 = vsyncpa [#allocation3], 1 }

</bundles_post_ra>
